<compile_context>
chip_gen: v7x
topology: tpu7x:2x2x1
jax: 0.10.0
libtpu: 0.0.40
codegen_flags: <defaults>
</compile_context>

<pallas_src>
from functools import partial

import jax
import jax.numpy as jnp
from jax.experimental import pallas as pl
from jax.experimental.pallas import tpu as pltpu

LANE = 128  # all layer widths here (16/30/15/10/4) fit in one 128-lane tile


def _round_up(a, m):
    return ((a + m - 1) // m) * m


def mlp_kernel(x_ref, w_ref, b_ref, o_ref, *, in_size):
    # x_ref: [TB, in_size]  w_ref: [4, 128, 128]  b_ref: [4, 128]  o_ref: [TB, 128]
    dt = w_ref.dtype                       # matmul dtype (bf16 or f32)
    b = b_ref[...]                         # single load of the packed bias slab (f32)

    # fc1 + ReLU  (only the real in_size rows of the padded fc1 weight are used)
    w1 = w_ref[0][:in_size, :]
    h = jnp.dot(x_ref[...], w1, preferred_element_type=jnp.float32) + b[0:1, :]
    h = jnp.maximum(h, 0.0).astype(dt)     # cast back so fc2 runs in matmul dtype
    # fc2 + ReLU
    h = jnp.dot(h, w_ref[1], preferred_element_type=jnp.float32) + b[1:2, :]
    h = jnp.maximum(h, 0.0).astype(dt)
    # fc3 + ReLU
    h = jnp.dot(h, w_ref[2], preferred_element_type=jnp.float32) + b[2:3, :]
    h = jnp.maximum(h, 0.0).astype(dt)
    # fc4 (no activation) -- lane-dense (128-wide) unmasked store
    out = jnp.dot(h, w_ref[3], preferred_element_type=jnp.float32) + b[3:4, :]
    o_ref[...] = out.astype(o_ref.dtype)


def _pad2d(a, rows, cols):
    return jnp.pad(a, ((0, rows - a.shape[0]), (0, cols - a.shape[1])))


def pack_params(params, matmul_dtype):
    """Pack 4 (W, b) pairs into one [4,128,128] weight slab + one [4,128] bias slab."""
    ws, bs = [], []
    for name in ("fc1", "fc2", "fc3", "fc4"):
        w, b = params[name]
        assert w.shape[0] <= LANE and w.shape[1] <= LANE, "layer wider than 128 lanes"
        ws.append(_pad2d(w.astype(matmul_dtype), LANE, LANE))
        bs.append(_pad2d(b.reshape(1, -1).astype(jnp.float32), 1, LANE))
    w_slab = jnp.stack(ws, axis=0)          # [4, 128, 128]  (matmul dtype)
    b_slab = jnp.concatenate(bs, axis=0)    # [4, 128]       (f32)
    return w_slab, b_slab


@partial(jax.jit, static_argnames=("tb", "matmul_dtype"))
def net_forward(x, params, *, tb=2048, matmul_dtype=jnp.bfloat16):
    """x: [B, input_size] float32; params: dict of (W, b) per layer.

    matmul_dtype=jnp.bfloat16 (default) is the MXU-native throughput path
    (f32 accumulation, f32 bias/ReLU).  Pass jnp.float32 for bit-exact
    agreement with the f32 reference.
    """
    B, in_size = x.shape
    out_size = params["fc4"][0].shape[1]
    assert in_size <= LANE and out_size <= LANE

    w_slab, b_slab = pack_params(params, matmul_dtype)

    # Batch tiling: pad rows to a multiple of 8 (sublane), then pick a tile so
    # that (a) steps stay <= tb, (b) the grid keeps >=2 parallel steps whenever
    # the batch allows -- v7x has 2 TensorCores and a 1-step grid uses only one.
    b8 = _round_up(B, 8)
    n_steps = max(1, -(-b8 // tb))
    if b8 >= 16:
        n_steps = max(n_steps, 2)
    tb_eff = _round_up(-(-b8 // n_steps), 8)
    b_pad = n_steps * tb_eff

    # Row-pad only (no lane padding of x), cast to the matmul dtype.
    x_prep = jnp.pad(x, ((0, b_pad - B), (0, 0))).astype(matmul_dtype)

    grid = (n_steps,)
    out = pl.pallas_call(
        partial(mlp_kernel, in_size=in_size),
        out_shape=jax.ShapeDtypeStruct((b_pad, LANE), jnp.float32),
        grid=grid,
        in_specs=[
            # activations: tiled on batch, minor dim = full array width (legal)
            pl.BlockSpec((tb_eff, in_size), lambda i: (i, 0)),
            # packed weights / biases: grid-resident (constant index_map)
            pl.BlockSpec((4, LANE, LANE), lambda i: (0, 0, 0)),
            pl.BlockSpec((4, LANE), lambda i: (0, 0)),
        ],
        out_specs=pl.BlockSpec((tb_eff, LANE), lambda i: (i, 0)),
        compiler_params=pltpu.CompilerParams(
            dimension_semantics=("parallel",)),   # batch axis -> both TCs on v7x
    )(x_prep, w_slab, b_slab)

    return out[:B, :out_size]


def init_params(key, input_size, output_size,
                fc1_units=30, fc2_units=15, fc3_units=10):
    """PyTorch-Linear-style init (uniform +/- 1/sqrt(fan_in)).
    Weights stored as [in, out]; biases as [1, out]."""
    dims = [(input_size, fc1_units), (fc1_units, fc2_units),
            (fc2_units, fc3_units), (fc3_units, output_size)]
    names = ["fc1", "fc2", "fc3", "fc4"]
    params = {}
    for name, (fan_in, fan_out) in zip(names, dims):
        key, kw, kb = jax.random.split(key, 3)
        bound = 1.0 / jnp.sqrt(jnp.float32(fan_in))
        w = jax.random.uniform(kw, (fan_in, fan_out), jnp.float32, -bound, bound)
        b = jax.random.uniform(kb, (1, fan_out), jnp.float32, -bound, bound)
        params[name] = (w, b)
    return params


def reference_forward(x, params):
    """Pure-JAX reference of the PyTorch forward pass."""
    (w1, b1), (w2, b2), (w3, b3), (w4, b4) = (
        params["fc1"], params["fc2"], params["fc3"], params["fc4"])
    h = jax.nn.relu(x @ w1 + b1)
    h = jax.nn.relu(h @ w2 + b2)
    h = jax.nn.relu(h @ w3 + b3)
    return h @ w4 + b4


if __name__ == "__main__":
    input_size = 16
    output_size = 4
    batch = 8

    key = jax.random.PRNGKey(0)
    key, kx = jax.random.split(key)
    params = init_params(key, input_size, output_size)
    x = jax.random.normal(kx, (batch, input_size), jnp.float32)

    # Default throughput path: bf16 matmul inputs, f32 accumulation.
    out_bf16 = net_forward(x, params)
    jax.block_until_ready(out_bf16)

    # Exact path for tight numerical validation.
    out_f32 = net_forward(x, params, matmul_dtype=jnp.float32)
    jax.block_until_ready(out_f32)

    ref = reference_forward(x, params)
    assert out_bf16.shape == (batch, output_size)
    assert out_f32.shape == (batch, output_size)
    assert jnp.allclose(out_f32, ref, atol=1e-5, rtol=1e-5)
    # bf16 matmul inputs -> loosened tolerance (f32 accumulate, 4 layers).
    assert jnp.allclose(out_bf16, ref, atol=5e-2, rtol=5e-2)

    print("KERNEL_OK")
</pallas_src>

<mosaic_0001>
module attributes {stable_mosaic.version = 11 : i64} {
  func.func @mlp_kernel(%arg0: i32, %arg1: memref<8x16xbf16, #tpu.memory_space<vmem>>, %arg2: memref<4x128x128xbf16, #tpu.memory_space<vmem>>, %arg3: memref<4x128xf32, #tpu.memory_space<vmem>>, %arg4: memref<8x128xf32, #tpu.memory_space<vmem>>) attributes {dimension_semantics = [#tpu.dimension_semantics<parallel>], iteration_bounds = array<i64: 1>, scalar_prefetch = 0 : i64, scratch_operands = 0 : i64, tpu.core_type = #tpu.core_type<tc>, window_params = [{transform_indices = @transform_0, window_bounds = array<i64: 8, 16>}, {pipeline_mode = #tpu.pipeline_mode<synchronous>, transform_indices = @transform_1, window_bounds = array<i64: 4, 128, 128>}, {pipeline_mode = #tpu.pipeline_mode<synchronous>, transform_indices = @transform_2, window_bounds = array<i64: 4, 128>}, {transform_indices = @transform_3, window_bounds = array<i64: 8, 128>}]} {
    %c0 = arith.constant 0 : index
    %c0_0 = arith.constant 0 : index
    %0 = vector.load %arg3[%c0, %c0_0] : memref<4x128xf32, #tpu.memory_space<vmem>>, vector<4x128xf32>
    %c0_1 = arith.constant 0 : index
    %c0_2 = arith.constant 0 : index
    %c0_3 = arith.constant 0 : index
    %1 = vector.load %arg2[%c0_1, %c0_2, %c0_3] : memref<4x128x128xbf16, #tpu.memory_space<vmem>>, vector<1x128x128xbf16>
    %2 = vector.shape_cast %1 : vector<1x128x128xbf16> to vector<128x128xbf16>
    %3 = vector.extract_strided_slice %2 {offsets = [0, 0], sizes = [16, 128], strides = [1, 1]} : vector<128x128xbf16> to vector<16x128xbf16>
    %c0_4 = arith.constant 0 : index
    %c0_5 = arith.constant 0 : index
    %4 = vector.load %arg1[%c0_4, %c0_5] : memref<8x16xbf16, #tpu.memory_space<vmem>>, vector<8x16xbf16>
    %cst = arith.constant dense<0.000000e+00> : vector<8x128xf32>
    %5 = tpu.matmul %4, %3, %cst {dimension_numbers = #tpu.dot_dimension_numbers<[1], [0], [0], [1], [0, 0, 1, 1], [], []>} : vector<8x16xbf16>, vector<16x128xbf16>, vector<8x128xf32> -> vector<8x128xf32>
    %6 = vector.extract_strided_slice %0 {offsets = [0, 0], sizes = [1, 128], strides = [1, 1]} : vector<4x128xf32> to vector<1x128xf32>
    %7 = vector.broadcast %6 : vector<1x128xf32> to vector<8x128xf32>
    %8 = arith.addf %5, %7 : vector<8x128xf32>
    %cst_6 = arith.constant 0.000000e+00 : f32
    %9 = vector.broadcast %cst_6 : f32 to vector<8x128xf32>
    %10 = arith.maximumf %8, %9 : vector<8x128xf32>
    %11 = arith.truncf %10 : vector<8x128xf32> to vector<8x128xbf16>
    %c1 = arith.constant 1 : index
    %c0_7 = arith.constant 0 : index
    %c0_8 = arith.constant 0 : index
    %12 = vector.load %arg2[%c1, %c0_7, %c0_8] : memref<4x128x128xbf16, #tpu.memory_space<vmem>>, vector<1x128x128xbf16>
    %13 = vector.shape_cast %12 : vector<1x128x128xbf16> to vector<128x128xbf16>
    %cst_9 = arith.constant dense<0.000000e+00> : vector<8x128xf32>
    %14 = tpu.matmul %11, %13, %cst_9 {dimension_numbers = #tpu.dot_dimension_numbers<[1], [0], [0], [1], [0, 0, 1, 1], [], []>} : vector<8x128xbf16>, vector<128x128xbf16>, vector<8x128xf32> -> vector<8x128xf32>
    %15 = vector.extract_strided_slice %0 {offsets = [1, 0], sizes = [1, 128], strides = [1, 1]} : vector<4x128xf32> to vector<1x128xf32>
    %16 = vector.broadcast %15 : vector<1x128xf32> to vector<8x128xf32>
    %17 = arith.addf %14, %16 : vector<8x128xf32>
    %cst_10 = arith.constant 0.000000e+00 : f32
    %18 = vector.broadcast %cst_10 : f32 to vector<8x128xf32>
    %19 = arith.maximumf %17, %18 : vector<8x128xf32>
    %20 = arith.truncf %19 : vector<8x128xf32> to vector<8x128xbf16>
    %c2 = arith.constant 2 : index
    %c0_11 = arith.constant 0 : index
    %c0_12 = arith.constant 0 : index
    %21 = vector.load %arg2[%c2, %c0_11, %c0_12] : memref<4x128x128xbf16, #tpu.memory_space<vmem>>, vector<1x128x128xbf16>
    %22 = vector.shape_cast %21 : vector<1x128x128xbf16> to vector<128x128xbf16>
    %cst_13 = arith.constant dense<0.000000e+00> : vector<8x128xf32>
    %23 = tpu.matmul %20, %22, %cst_13 {dimension_numbers = #tpu.dot_dimension_numbers<[1], [0], [0], [1], [0, 0, 1, 1], [], []>} : vector<8x128xbf16>, vector<128x128xbf16>, vector<8x128xf32> -> vector<8x128xf32>
    %24 = vector.extract_strided_slice %0 {offsets = [2, 0], sizes = [1, 128], strides = [1, 1]} : vector<4x128xf32> to vector<1x128xf32>
    %25 = vector.broadcast %24 : vector<1x128xf32> to vector<8x128xf32>
    %26 = arith.addf %23, %25 : vector<8x128xf32>
    %cst_14 = arith.constant 0.000000e+00 : f32
    %27 = vector.broadcast %cst_14 : f32 to vector<8x128xf32>
    %28 = arith.maximumf %26, %27 : vector<8x128xf32>
    %29 = arith.truncf %28 : vector<8x128xf32> to vector<8x128xbf16>
    %c3 = arith.constant 3 : index
    %c0_15 = arith.constant 0 : index
    %c0_16 = arith.constant 0 : index
    %30 = vector.load %arg2[%c3, %c0_15, %c0_16] : memref<4x128x128xbf16, #tpu.memory_space<vmem>>, vector<1x128x128xbf16>
    %31 = vector.shape_cast %30 : vector<1x128x128xbf16> to vector<128x128xbf16>
    %cst_17 = arith.constant dense<0.000000e+00> : vector<8x128xf32>
    %32 = tpu.matmul %29, %31, %cst_17 {dimension_numbers = #tpu.dot_dimension_numbers<[1], [0], [0], [1], [0, 0, 1, 1], [], []>} : vector<8x128xbf16>, vector<128x128xbf16>, vector<8x128xf32> -> vector<8x128xf32>
    %33 = vector.extract_strided_slice %0 {offsets = [3, 0], sizes = [1, 128], strides = [1, 1]} : vector<4x128xf32> to vector<1x128xf32>
    %34 = vector.broadcast %33 : vector<1x128xf32> to vector<8x128xf32>
    %35 = arith.addf %32, %34 : vector<8x128xf32>
    %c0_18 = arith.constant 0 : index
    %c0_19 = arith.constant 0 : index
    %36 = vector.load %arg4[%c0_18, %c0_19] : memref<8x128xf32, #tpu.memory_space<vmem>>, vector<8x128xf32>
    tpu.vector_store %arg4[%c0_18, %c0_19], %35 {strides = array<i32>} : memref<8x128xf32, #tpu.memory_space<vmem>>, vector<8x128xf32>,
    return
  }
  func.func @transform_0(%arg0: i32) -> (i32, i32) {
    %c0_i32 = arith.constant 0 : i32
    %c0_i32_0 = arith.constant 0 : i32
    return %arg0, %c0_i32 : i32, i32
  }
  func.func @transform_1(%arg0: i32) -> (i32, i32, i32) {
    %c0_i32 = arith.constant 0 : i32
    %c0_i32_0 = arith.constant 0 : i32
    %c0_i32_1 = arith.constant 0 : i32
    %c0_i32_2 = arith.constant 0 : i32
    return %c0_i32, %c0_i32_0, %c0_i32_1 : i32, i32, i32
  }
  func.func @transform_2(%arg0: i32) -> (i32, i32) {
    %c0_i32 = arith.constant 0 : i32
    %c0_i32_0 = arith.constant 0 : i32
    %c0_i32_1 = arith.constant 0 : i32
    return %c0_i32, %c0_i32_0 : i32, i32
  }
  func.func @transform_3(%arg0: i32) -> (i32, i32) {
    %c0_i32 = arith.constant 0 : i32
    %c0_i32_0 = arith.constant 0 : i32
    return %arg0, %c0_i32 : i32, i32
  }
}

</mosaic_0001>

<bundles_post_ra>
// kernel: net_forward.1
= control target key start
LH: loop header
LB: loop body
LE: loop exit
PB: predicated region body
PF: predicated region fallthrough
CT: control target
= control target key end

     0   :  { %v607_v0 = vmov 0.0   ;;  %vm608_vm0 = vmmov 0   ;;  %vm29_vm1 = vcmask 130048   ;;  %v19_v17 = vlaneseq  ;;  %s752_s1 = inlined_call_operand.vmem [shape: bf16[4,128,128], index: 1, kind: input, shape index: {}]   ;;  %s753_s0 = inlined_call_operand.vmem [shape: bf16[8,16], index: 0, kind: input, shape index: {}]   ;;  %s754_s2 = inlined_call_operand.vmem [shape: f32[4,128], index: 2, kind: input, shape index: {}]   ;;  %s755_s3 = inlined_call_operand.vmem [shape: f32[8,128], index: 3, kind: output, shape index: {}]  }
   0x1   :  { %514 = vmatprep.subr.bf16.mxu0 %v607_v0  ;;  %v582_v1 = vld [vmem:[%s752_s1] sm:$0xff]   ;;  %516 = vmatprep.mubr.msk.bf16.mxu0 %vm608_vm0, %v607_v0  ;;  %v584_v4 = vld [vmem:[%s752_s1 + $0x48] sm:$0xff]   ;;  %v585_v5 = vld [vmem:[%s752_s1 + $0x50] sm:$0xff]  }
   0x2   :  { %v18_v2 = vld [vmem:[%s753_s0] sm:$0xf]  ;;  %520 = vmatprep.subr.bf16.mxu1 %v607_v0  ;;  %536 = vmatprep.mubr.msk.bf16.mxu1 %vm608_vm0, %v607_v0  ;;  %v586_v6 = vld [vmem:[%s752_s1 + $0x58] sm:$0xff]   ;;  %v588_v8 = vld [vmem:[%s752_s1 + $0x68] sm:$0xff]   ;;  %v700_v18 = vshrl.u32 %v19_v17, 7 }
   0x3   :  { %515 = vmatpush3.bf16.msra.mxu0 %v582_v1  ;;  %v583_v3 = vld [vmem:[%s752_s1 + $0x40] sm:$0xff]   ;;  %v589_v9 = vld [vmem:[%s752_s1 + $0x70] sm:$0xff]   ;;  %v590_v10 = vld [vmem:[%s752_s1 + $0x78] sm:$0xff]  }
   0x4   :  { %540 = vmatprep.subr.bf16.mxu0 %v607_v0  ;;  %521 = vmatpush3.bf16.msra.mxu1 %v583_v3  ;;  %v587_v7 = vld [vmem:[%s752_s1 + $0x60] sm:$0xff]   ;;  %v592_v12 = vld [vmem:[%s752_s1 + $0x88] sm:$0xff]   ;;  %v593_v13 = vld [vmem:[%s752_s1 + $0x90] sm:$0xff]   ;;  %v21_v19 = vsub.s32 0, %v700_v18  ;;  %v94_v37 = vsub.s32 1, %v700_v18  ;;  %v205_v48 = vsub.s32 2, %v700_v18 }
   0x5   :  { %522 = vmatprep.subr.bf16.mxu1 %v607_v0  ;;  %v591_v11 = vld [vmem:[%s752_s1 + $0x80] sm:$0xff]   ;;  %v594_v14 = vld [vmem:[%s752_s1 + $0x98] sm:$0xff]   ;;  %v596_v16 = vld [vmem:[%s752_s1 + $0xa8] sm:$0xff]   ;;  %v316_v57 = vsub.s32 3, %v700_v18 }
   0x6   :  { %517 = vmatmul.mubr.msk.bf16.vlgmr.msra.gmra.mrb[0].mxu0 %vm29_vm1, %v18_v2  ;;  %v595_v15 = vld [vmem:[%s752_s1 + $0xa0] sm:$0xff]   ;;  %v597_v29 = vld [vmem:[%s752_s1 + $0xb0] sm:$0xff]   ;;  %v598_v30 = vld [vmem:[%s752_s1 + $0xb8] sm:$0xff]  }
   0x7   :  { %556 = vmatprep.mubr.msk.bf16.mxu0 %vm608_vm0, %v607_v0  ;;  %541 = vmatpush3.bf16.msra.mxu0 %v591_v11  ;;  %v15_v20 = vld [vmem:[%s754_s2] sm:$0xf]  ;;  %v600_v32 = vld [vmem:[%s752_s1 + $0xc8] sm:$0xff]   ;;  %v601_v33 = vld [vmem:[%s752_s1 + $0xd0] sm:$0xff]  }
   0x8   :  { %523 = vmatpush3.bf16.msra.mxu1 %v584_v4  ;;  %542 = vmatprep.subr.bf16.mxu0 %v607_v0  ;;  %v22_v21 = vrot.slane %v15_v20, %v21_v19  ;;  %v599_v31 = vld [vmem:[%s752_s1 + $0xc0] sm:$0xff]   ;;  %v602_v34 = vld [vmem:[%s752_s1 + $0xd8] sm:$0xff]   ;;  %v604_v36 = vld [vmem:[%s752_s1 + $0xe8] sm:$0xff]   ;;  %v95_v38 = vrot.slane %v15_v20, %v94_v37  ;;  %v206_v49 = vrot.slane %v15_v20, %v205_v48 }
   0x9   :  { %524 = vmatprep.subr.bf16.mxu1 %v607_v0  ;;  %v603_v35 = vld [vmem:[%s752_s1 + $0xe0] sm:$0xff]   ;;  %v605_v46 = vld [vmem:[%s752_s1 + $0xf0] sm:$0xff]   ;;  %v606_v47 = vld [vmem:[%s752_s1 + $0xf8] sm:$0xff]   ;;  %v317_v58 = vrot.slane %v15_v20, %v316_v57 }
   0xb   :  { %543 = vmatpush3.bf16.msra.mxu0 %v592_v12 }
   0xc   :  { %525 = vmatpush3.bf16.msra.mxu1 %v585_v5  ;;  %544 = vmatprep.subr.bf16.mxu0 %v607_v0 }
   0xd   :  { %526 = vmatprep.subr.bf16.mxu1 %v607_v0 }
   0xf   :  { %545 = vmatpush3.bf16.msra.mxu0 %v593_v13 }
  0x10   :  { %527 = vmatpush3.bf16.msra.mxu1 %v586_v6  ;;  %546 = vmatprep.subr.bf16.mxu0 %v607_v0 }
  0x11   :  { %528 = vmatprep.subr.bf16.mxu1 %v607_v0 }
  0x13   :  { %547 = vmatpush3.bf16.msra.mxu0 %v594_v14 }
  0x14   :  { %529 = vmatpush3.bf16.msra.mxu1 %v587_v7  ;;  %548 = vmatprep.subr.bf16.mxu0 %v607_v0 }
  0x15   :  { %530 = vmatprep.subr.bf16.mxu1 %v607_v0 }
  0x17   :  { %549 = vmatpush3.bf16.msra.mxu0 %v595_v15 }
  0x18   :  { %531 = vmatpush3.bf16.msra.mxu1 %v588_v8  ;;  %550 = vmatprep.subr.bf16.mxu0 %v607_v0 }
  0x19   :  { %532 = vmatprep.subr.bf16.mxu1 %v607_v0 }
  0x1b   :  { %551 = vmatpush3.bf16.msra.mxu0 %v596_v16 }
  0x1c   :  { %533 = vmatpush3.bf16.msra.mxu1 %v589_v9  ;;  %552 = vmatprep.subr.bf16.mxu0 %v607_v0 }
  0x1d   :  { %534 = vmatprep.subr.bf16.mxu1 %v607_v0 }
  0x1f   :  { %553 = vmatpush3.bf16.msra.mxu0 %v597_v29 }
  0x20   :  { %535 = vmatpush3.bf16.msra.mxu1 %v590_v10  ;;  %554 = vmatprep.subr.bf16.mxu0 %v607_v0 }
  0x21   :  { %560 = vmatprep.subr.bf16.mxu1 %v607_v0 }
  0x23   :  { %555 = vmatpush3.bf16.msra.mxu0 %v598_v30 }
  0xd9   :  { %v67_v22 = vpop.f32.mrb[0].mxu0 }
  0xda   :  { %v68_v23 = vadd.f32 %v67_v22, %v22_v21  ;;  %v518_v24 = vpop.f32.mrb[1].mxu0 }
  0xdb   :  { %v70_v25 = vpop.f32.mrb[2].mxu0 }
  0xdc   :  { %v73_v26 = vmax.f32 %v68_v23, 0.0  ;;  %v519_v27 = vpop.f32.mrb[3].mxu0 }
  0xde   :  { %v74_v28 = vpack.c.bf16 %v73_v26, %v73_v26 }
  0xe0   :  { %537 = vmatmul.mubr.bf16.vlgmr.msra.gmra.mrb[0].mxu1 %v74_v28 }
  0xe1   :  { %576 = vmatprep.mubr.msk.bf16.mxu1 %vm608_vm0, %v607_v0  ;;  %561 = vmatpush3.bf16.msra.mxu1 %v599_v31 }
  0xe2   :  { %562 = vmatprep.subr.bf16.mxu1 %v607_v0 }
  0xe5   :  { %563 = vmatpush3.bf16.msra.mxu1 %v600_v32 }
  0xe6   :  { %564 = vmatprep.subr.bf16.mxu1 %v607_v0 }
  0xe9   :  { %565 = vmatpush3.bf16.msra.mxu1 %v601_v33 }
  0xea   :  { %566 = vmatprep.subr.bf16.mxu1 %v607_v0 }
  0xed   :  { %567 = vmatpush3.bf16.msra.mxu1 %v602_v34 }
  0xee   :  { %568 = vmatprep.subr.bf16.mxu1 %v607_v0 }
  0xf1   :  { %569 = vmatpush3.bf16.msra.mxu1 %v603_v35 }
  0xf2   :  { %570 = vmatprep.subr.bf16.mxu1 %v607_v0 }
  0xf5   :  { %571 = vmatpush3.bf16.msra.mxu1 %v604_v36 }
  0xf6   :  { %572 = vmatprep.subr.bf16.mxu1 %v607_v0 }
  0xf9   :  { %573 = vmatpush3.bf16.msra.mxu1 %v605_v46 }
  0xfa   :  { %574 = vmatprep.subr.bf16.mxu1 %v607_v0 }
  0xfd   :  { %575 = vmatpush3.bf16.msra.mxu1 %v606_v47 }
 0x1b3   :  { %v178_v39 = vpop.f32.mrb[0].mxu1 }
 0x1b4   :  { %v179_v40 = vadd.f32 %v178_v39, %v95_v38  ;;  %v538_v41 = vpop.f32.mrb[1].mxu1 }
 0x1b5   :  { %v181_v42 = vpop.f32.mrb[2].mxu1 }
 0x1b6   :  { %v184_v43 = vmax.f32 %v179_v40, 0.0  ;;  %v539_v44 = vpop.f32.mrb[3].mxu1 }
 0x1b8   :  { %v185_v45 = vpack.c.bf16 %v184_v43, %v184_v43 }
 0x1ba   :  { %557 = vmatmul.mubr.bf16.vlgmr.msra.gmra.mrb[4].mxu0 %v185_v45 }
 0x28d   :  { %v289_v50 = vpop.f32.mrb[4].mxu0 }
 0x28e   :  { %v290_v51 = vadd.f32 %v289_v50, %v206_v49  ;;  %v558_v52 = vpop.f32.mrb[5].mxu0 }
 0x28f   :  { %v292_v53 = vpop.f32.mrb[6].mxu0 }
 0x290   :  { %v295_v54 = vmax.f32 %v290_v51, 0.0  ;;  %v559_v55 = vpop.f32.mrb[7].mxu0 }
 0x292   :  { %v296_v56 = vpack.c.bf16 %v295_v54, %v295_v54 }
 0x294   :  { %577 = vmatmul.mubr.bf16.vlgmr.msra.gmra.mrb[4].mxu1 %v296_v56 }
 0x367   :  { %v400_v59 = vpop.f32.mrb[4].mxu1 }
 0x368   :  { %v401_v60 = vadd.f32 %v400_v59, %v317_v58  ;;  %v578_v61 = vpop.f32.mrb[5].mxu1 }
 0x369   :  { %v403_v62 = vpop.f32.mrb[6].mxu1 }
 0x36a   :  { %406 = vst [vmem:[%s755_s3] sm:$0xff] %v401_v60  ;;  %v579_v63 = vpop.f32.mrb[7].mxu1 }

</bundles_post_ra>
